<compile_context>
chip_gen: v7x
topology: tpu7x:2x2x1
jax: 0.10.0
libtpu: 0.0.40
codegen_flags: <defaults>
</compile_context>

<pallas_src>
import jax
import jax.numpy as jnp
from jax.experimental import pallas as pl
from jax.experimental.pallas import tpu as pltpu


def _round_up(n, m):
    return ((n + m - 1) // m) * m


def _mlp_kernel(x_ref, w0_ref, b0_ref, w1_ref, b1_ref, w2_ref, b2_ref, o_ref):
    """One batch tile. Hidden activations are batch-on-lanes: (H, TB)."""
    x = x_ref[...]                                            # (TB, F) f32

    # layer 0: h0 = relu(W0 @ x^T + b0)                       -> (H, TB)
    # Contract the last dim of both operands (A @ B^T, flash-attention style):
    # x is consumed via a transposed MXU weight push, no XLU relayout.
    h0 = jax.lax.dot_general(
        w0_ref[...], x,
        dimension_numbers=(((1,), (1,)), ((), ())),
        preferred_element_type=jnp.float32) + b0_ref[...]
    h0 = jnp.maximum(h0, 0.0)

    # layer 1: h1 = relu(W1 @ h0 + b1)                        -> (H, TB)
    h1 = jnp.dot(w1_ref[...], h0,
                 preferred_element_type=jnp.float32) + b1_ref[...]
    h1 = jnp.maximum(h1, 0.0)

    # layer 2: logits = W2 @ h1 + b2                          -> (1, TB)
    logits = jnp.dot(w2_ref[...], h1,
                     preferred_element_type=jnp.float32) + b2_ref[...]

    # Numerically-stable sigmoid.  exp and the approximate reciprocal both run
    # on the EUP (its own bundle slot); one Newton step restores f32 accuracy.
    e = jnp.exp(-jnp.abs(logits))          # in (0, 1], never overflows
    d = 1.0 + e                            # in (1, 2]
    r = pl.reciprocal(d, approx=True)
    r = r * (2.0 - d * r)                  # Newton refinement
    o_ref[...] = jnp.where(logits >= 0.0, r, e * r)


def nn_forward(x, params, *, block_b=16384):
    """x: (B, 32) float32 -> (B, 1) float32 (matches torch NN.forward).

    params: [(W0, b0), (W1, b1), (W2, b2)] with W_i in PyTorch (out, in)
    layout and b_i of shape (out, 1).
    """
    (w0, b0), (w1, b1), (w2, b2) = params
    B, F = x.shape
    H = w0.shape[0]

    # TB = 32768 needs ~40 MiB of (lane-padded) VMEM: fine on v5e/v6e, and
    # still under v7x's 64 MiB physical.  Default 16384 (~20 MiB) everywhere.
    block_b = max(128, min(int(block_b), 32768))

    if B >= 256:
        # Multiple of 128 (lane-dense output blocks), capped so the grid has
        # at least 2 steps -> both v7x TensorCores get work.
        cap = _round_up(pl.cdiv(B, 2), 128)
        TB = max(128, (min(block_b, cap) // 128) * 128)
    else:
        # Tiny batch: a single full-extent block (block == array dims).
        TB = B
    grid = (pl.cdiv(B, TB),)          # last block may be partial (no jnp.pad)

    resident = lambda a: pl.BlockSpec(a.shape, lambda i: (0, 0))

    # Lane/sublane-padded VMEM footprint: x tile padded to 128 lanes
    # (TB*512 B, double-buffered), (8, TB)-padded intermediates/output, slack.
    x_buf_bytes = TB * 128 * 4
    act_bytes = 8 * TB * 4
    vmem_needed = 2 * x_buf_bytes + 8 * act_bytes + (4 << 20)
    vmem_limit = int(min(max(vmem_needed, 32 << 20), 60 << 20))

    param_bytes = sum(int(a.size) * 4 for pair in params for a in pair)
    cost = pl.CostEstimate(
        flops=2 * B * (F * H + H * H + H),
        transcendentals=B,
        bytes_accessed=B * F * 4 + B * 4 + param_bytes,
    )

    out = pl.pallas_call(
        _mlp_kernel,
        out_shape=jax.ShapeDtypeStruct((1, B), jnp.float32),
        grid=grid,
        in_specs=[
            pl.BlockSpec((TB, F), lambda i: (i, 0)),   # streamed x tile
            resident(w0), resident(b0),
            resident(w1), resident(b1),
            resident(w2), resident(b2),
        ],
        out_specs=pl.BlockSpec((1, TB), lambda i: (0, i)),   # lane-dense output
        compiler_params=pltpu.CompilerParams(
            dimension_semantics=("parallel",),
            vmem_limit_bytes=vmem_limit,
        ),
        cost_estimate=cost,
    )(x, w0, b0, w1, b1, w2, b2)

    return out.reshape(B, 1)      # (1, B) -> (B, 1) is a free reshape


def init_params(key, input_feature=32, num_hidden_layers=3, num_hidden_size=5):
    """Parameter init mimicking kaiming_uniform_(nonlinearity='relu') for the
    hidden layers (bound sqrt(6/fan_in)) and nn.Linear's default bias init.
    Weights returned in PyTorch (out_features, in_features) layout, biases as
    (out_features, 1).  (Init choice does not affect kernel semantics.)"""
    dims = []
    fin = input_feature
    for _ in range(num_hidden_layers - 1):
        dims.append((fin, num_hidden_size))
        fin = num_hidden_size
    dims.append((fin, 1))

    params = []
    for li, (din, dout) in enumerate(dims):
        key, kw, kb = jax.random.split(key, 3)
        is_last = li == len(dims) - 1
        wb = (1.0 / jnp.sqrt(din)) if is_last else jnp.sqrt(6.0 / din)
        w = jax.random.uniform(kw, (dout, din), jnp.float32, -wb, wb)
        bb = 1.0 / jnp.sqrt(din)
        b = jax.random.uniform(kb, (dout, 1), jnp.float32, -bb, bb)
        params.append((w, b))
    return params


def _ref_forward(x, params):
    (w0, b0), (w1, b1), (w2, b2) = params
    h = jnp.maximum(x @ w0.T + b0.T, 0.0)
    h = jnp.maximum(h @ w1.T + b1.T, 0.0)
    return jax.nn.sigmoid(h @ w2.T + b2.T)


if __name__ == "__main__":
    key = jax.random.PRNGKey(0)
    kx, kp, kx2 = jax.random.split(key, 3)

    B, F = 8, 32
    x = jax.random.normal(kx, (B, F), dtype=jnp.float32)
    params = init_params(kp, input_feature=F)

    out = jax.block_until_ready(nn_forward(x, params))
    ref = _ref_forward(x, params)
    assert out.shape == (B, 1)
    assert jnp.allclose(out, ref, atol=1e-4), "mismatch vs reference (B=8)"

    # Exercise the multi-step grid + partial-last-block path with a small tile.
    B2 = 300
    x2 = jax.random.normal(kx2, (B2, F), dtype=jnp.float32)
    out2 = jax.block_until_ready(nn_forward(x2, params, block_b=128))
    ref2 = _ref_forward(x2, params)
    assert out2.shape == (B2, 1)
    assert jnp.allclose(out2, ref2, atol=1e-4), "mismatch vs reference (B=300)"

    print("KERNEL_OK")
</pallas_src>

<mosaic_0001>
module attributes {stable_mosaic.version = 11 : i64} {
  func.func @_mlp_kernel(%arg0: i32, %arg1: memref<8x32xf32, #tpu.memory_space<vmem>>, %arg2: memref<5x32xf32, #tpu.memory_space<vmem>>, %arg3: memref<5x1xf32, #tpu.memory_space<vmem>>, %arg4: memref<5x5xf32, #tpu.memory_space<vmem>>, %arg5: memref<5x1xf32, #tpu.memory_space<vmem>>, %arg6: memref<1x5xf32, #tpu.memory_space<vmem>>, %arg7: memref<1x1xf32, #tpu.memory_space<vmem>>, %arg8: memref<1x8xf32, #tpu.memory_space<vmem>>) attributes {dimension_semantics = [#tpu.dimension_semantics<parallel>], iteration_bounds = array<i64: 1>, scalar_prefetch = 0 : i64, scratch_operands = 0 : i64, tpu.core_type = #tpu.core_type<tc>, window_params = [{transform_indices = @transform_0, window_bounds = array<i64: 8, 32>}, {pipeline_mode = #tpu.pipeline_mode<synchronous>, transform_indices = @transform_1, window_bounds = array<i64: 5, 32>}, {pipeline_mode = #tpu.pipeline_mode<synchronous>, transform_indices = @transform_2, window_bounds = array<i64: 5, 1>}, {pipeline_mode = #tpu.pipeline_mode<synchronous>, transform_indices = @transform_3, window_bounds = array<i64: 5, 5>}, {pipeline_mode = #tpu.pipeline_mode<synchronous>, transform_indices = @transform_4, window_bounds = array<i64: 5, 1>}, {pipeline_mode = #tpu.pipeline_mode<synchronous>, transform_indices = @transform_5, window_bounds = array<i64: 1, 5>}, {pipeline_mode = #tpu.pipeline_mode<synchronous>, transform_indices = @transform_6, window_bounds = array<i64: 1, 1>}, {transform_indices = @transform_7, window_bounds = array<i64: 1, 8>}]} {
    %c0 = arith.constant 0 : index
    %c0_0 = arith.constant 0 : index
    %0 = vector.load %arg1[%c0, %c0_0] : memref<8x32xf32, #tpu.memory_space<vmem>>, vector<8x32xf32>
    %c0_1 = arith.constant 0 : index
    %c0_2 = arith.constant 0 : index
    %1 = vector.load %arg2[%c0_1, %c0_2] : memref<5x32xf32, #tpu.memory_space<vmem>>, vector<5x32xf32>
    %cst = arith.constant dense<0.000000e+00> : vector<5x8xf32>
    %2 = tpu.matmul %1, %0, %cst {dimension_numbers = #tpu.dot_dimension_numbers<[1], [1], [0], [0], [0, 0, 1, 0], [], []>} : vector<5x32xf32>, vector<8x32xf32>, vector<5x8xf32> -> vector<5x8xf32>
    %c0_3 = arith.constant 0 : index
    %c0_4 = arith.constant 0 : index
    %3 = vector.load %arg3[%c0_3, %c0_4] : memref<5x1xf32, #tpu.memory_space<vmem>>, vector<5x1xf32>
    %4 = vector.broadcast %3 : vector<5x1xf32> to vector<5x8xf32>
    %5 = arith.addf %2, %4 : vector<5x8xf32>
    %cst_5 = arith.constant 0.000000e+00 : f32
    %6 = vector.broadcast %cst_5 : f32 to vector<5x8xf32>
    %7 = arith.maximumf %5, %6 : vector<5x8xf32>
    %c0_6 = arith.constant 0 : index
    %c0_7 = arith.constant 0 : index
    %8 = vector.load %arg4[%c0_6, %c0_7] : memref<5x5xf32, #tpu.memory_space<vmem>>, vector<5x5xf32>
    %cst_8 = arith.constant dense<0.000000e+00> : vector<5x8xf32>
    %9 = tpu.matmul %8, %7, %cst_8 {dimension_numbers = #tpu.dot_dimension_numbers<[1], [0], [0], [1], [0, 0, 1, 1], [], []>} : vector<5x5xf32>, vector<5x8xf32>, vector<5x8xf32> -> vector<5x8xf32>
    %c0_9 = arith.constant 0 : index
    %c0_10 = arith.constant 0 : index
    %10 = vector.load %arg5[%c0_9, %c0_10] : memref<5x1xf32, #tpu.memory_space<vmem>>, vector<5x1xf32>
    %11 = vector.broadcast %10 : vector<5x1xf32> to vector<5x8xf32>
    %12 = arith.addf %9, %11 : vector<5x8xf32>
    %cst_11 = arith.constant 0.000000e+00 : f32
    %13 = vector.broadcast %cst_11 : f32 to vector<5x8xf32>
    %14 = arith.maximumf %12, %13 : vector<5x8xf32>
    %c0_12 = arith.constant 0 : index
    %c0_13 = arith.constant 0 : index
    %15 = vector.load %arg6[%c0_12, %c0_13] : memref<1x5xf32, #tpu.memory_space<vmem>>, vector<1x5xf32>
    %cst_14 = arith.constant dense<0.000000e+00> : vector<1x8xf32>
    %16 = tpu.matmul %15, %14, %cst_14 {dimension_numbers = #tpu.dot_dimension_numbers<[1], [0], [0], [1], [0, 0, 1, 1], [], []>} : vector<1x5xf32>, vector<5x8xf32>, vector<1x8xf32> -> vector<1x8xf32>
    %c0_15 = arith.constant 0 : index
    %c0_16 = arith.constant 0 : index
    %17 = vector.load %arg7[%c0_15, %c0_16] : memref<1x1xf32, #tpu.memory_space<vmem>>, vector<1x1xf32>
    %18 = vector.broadcast %17 : vector<1x1xf32> to vector<1x8xf32>
    %19 = arith.addf %16, %18 : vector<1x8xf32>
    %20 = math.absf %19 : vector<1x8xf32>
    %cst_17 = arith.constant 0.000000e+00 : f32
    %21 = vector.broadcast %cst_17 : f32 to vector<1x8xf32>
    %22 = arith.subf %21, %20 : vector<1x8xf32>
    %23 = math.exp %22 : vector<1x8xf32>
    %cst_18 = arith.constant 1.000000e+00 : f32
    %24 = vector.broadcast %cst_18 : f32 to vector<1x8xf32>
    %25 = arith.addf %24, %23 : vector<1x8xf32>
    %26 = tpu.reciprocal %25 {approx = true} : vector<1x8xf32> -> vector<1x8xf32>
    %27 = arith.mulf %25, %26 : vector<1x8xf32>
    %cst_19 = arith.constant 2.000000e+00 : f32
    %28 = vector.broadcast %cst_19 : f32 to vector<1x8xf32>
    %29 = arith.subf %28, %27 : vector<1x8xf32>
    %30 = arith.mulf %26, %29 : vector<1x8xf32>
    %cst_20 = arith.constant 0.000000e+00 : f32
    %31 = vector.broadcast %cst_20 : f32 to vector<1x8xf32>
    %32 = arith.cmpf oge, %19, %31 : vector<1x8xf32>
    %33 = arith.mulf %23, %30 : vector<1x8xf32>
    %34 = arith.select %32, %30, %33 : vector<1x8xi1>, vector<1x8xf32>
    %c0_21 = arith.constant 0 : index
    %c0_22 = arith.constant 0 : index
    %35 = vector.load %arg8[%c0_21, %c0_22] : memref<1x8xf32, #tpu.memory_space<vmem>>, vector<1x8xf32>
    tpu.vector_store %arg8[%c0_21, %c0_22], %34 {strides = array<i32>} : memref<1x8xf32, #tpu.memory_space<vmem>>, vector<1x8xf32>,
    return
  }
  func.func @transform_0(%arg0: i32) -> (i32, i32) {
    %c0_i32 = arith.constant 0 : i32
    %c0_i32_0 = arith.constant 0 : i32
    return %arg0, %c0_i32 : i32, i32
  }
  func.func @transform_1(%arg0: i32) -> (i32, i32) {
    %c0_i32 = arith.constant 0 : i32
    %c0_i32_0 = arith.constant 0 : i32
    %c0_i32_1 = arith.constant 0 : i32
    return %c0_i32, %c0_i32_0 : i32, i32
  }
  func.func @transform_2(%arg0: i32) -> (i32, i32) {
    %c0_i32 = arith.constant 0 : i32
    %c0_i32_0 = arith.constant 0 : i32
    %c0_i32_1 = arith.constant 0 : i32
    return %c0_i32, %c0_i32_0 : i32, i32
  }
  func.func @transform_3(%arg0: i32) -> (i32, i32) {
    %c0_i32 = arith.constant 0 : i32
    %c0_i32_0 = arith.constant 0 : i32
    %c0_i32_1 = arith.constant 0 : i32
    return %c0_i32, %c0_i32_0 : i32, i32
  }
  func.func @transform_4(%arg0: i32) -> (i32, i32) {
    %c0_i32 = arith.constant 0 : i32
    %c0_i32_0 = arith.constant 0 : i32
    %c0_i32_1 = arith.constant 0 : i32
    return %c0_i32, %c0_i32_0 : i32, i32
  }
  func.func @transform_5(%arg0: i32) -> (i32, i32) {
    %c0_i32 = arith.constant 0 : i32
    %c0_i32_0 = arith.constant 0 : i32
    %c0_i32_1 = arith.constant 0 : i32
    return %c0_i32, %c0_i32_0 : i32, i32
  }
  func.func @transform_6(%arg0: i32) -> (i32, i32) {
    %c0_i32 = arith.constant 0 : i32
    %c0_i32_0 = arith.constant 0 : i32
    %c0_i32_1 = arith.constant 0 : i32
    return %c0_i32, %c0_i32_0 : i32, i32
  }
  func.func @transform_7(%arg0: i32) -> (i32, i32) {
    %c0_i32 = arith.constant 0 : i32
    %c0_i32_0 = arith.constant 0 : i32
    return %c0_i32, %arg0 : i32, i32
  }
}

</mosaic_0001>

<bundles_post_ra>
// kernel: tpu_custom_call.1
= control target key start
LH: loop header
LB: loop body
LE: loop exit
PB: predicated region body
PF: predicated region fallthrough
CT: control target
= control target key end

     0   :  { %s461_s0 = inlined_call_operand.vmem [shape: f32[8,32], index: 0, kind: input, shape index: {}]   ;;  %s462_s1 = inlined_call_operand.vmem [shape: f32[5,32], index: 1, kind: input, shape index: {}]   ;;  %s463_s2 = inlined_call_operand.vmem [shape: f32[5,1], index: 2, kind: input, shape index: {}]   ;;  %s464_s3 = inlined_call_operand.vmem [shape: f32[5,5], index: 3, kind: input, shape index: {}]   ;;  %s465_s4 = inlined_call_operand.vmem [shape: f32[5,1], index: 4, kind: input, shape index: {}]   ;;  %s466_s5 = inlined_call_operand.vmem [shape: f32[1,5], index: 5, kind: input, shape index: {}]   ;;  %s467_s6 = inlined_call_operand.<no memory space> [shape: f32[1,1], index: 6, kind: input, shape index: {}]   ;;  %s468_s7 = inlined_call_operand.hbm [shape: f32[1,8], index: 7, kind: output, shape index: {}]  }
   0x1   :  { %v12_v0 = vstv %s467_s6 }
   0x2   :  { %13 = vst [vmem:[#allocation2] sm:$0x1] %v12_v0 }
   0x3   :  { %v29_v1 = vld [vmem:[%s461_s0] sm:$0xff]  ;;  %vm37_vm0 = vcmask 261120   ;;  %v377_v2 = vmov 0.0   ;;  %vm378_vm1 = vmmov 0   ;;  %v379_v5 = vmov 0  }
   0x4   :  { %328 = vmatprep.subr.mxu0 %v377_v2  ;;  %330 = vmatprep.mubr.msk.f32.mxu0 %vm378_vm1, %v377_v2  ;;  %v31_v3 = vld [vmem:[%s463_s2] sm:$0x1f] }
   0x5   :  { %329 = vmatpush3.xpose.msk.msra.mxu0 %vm37_vm0, %v29_v1  ;;  %v30_v4 = vld [vmem:[%s462_s1] sm:$0x1f]  ;;  %347 = vset.pattern.permute.xlu0 %v379_v5 }
   0x6   :  { %14 = vsyncpa [#allocation4], 0  ;;  %34 = vperm.xlu0 %347, %v31_v3   ;;  %333 = vmatprep.subr.mxu1 %v377_v2  ;;  %v116_v6 = vld [vmem:[%s465_s4] sm:$0x1f]  ;;  %vm126_vm2 = vcmask 1044480   ;;  %vm122_vm3 = vcmask 39936   ;;  %v208_v20 = vlaneseq }
   0x7   :  { %335 = vmatprep.mubr.msk.f32.mxu1 %vm378_vm1, %v377_v2  ;;  %348 = vset.pattern.permute.xlu1 %v379_v5  ;;  %v115_v12 = vld [vmem:[%s464_s3] sm:$0x1f]  ;;  %s380_s3 = smov [#allocation3]   ;;  %vm300_vm4 = vcmask 57344  }
   0x8   :  { %331 = vmatmul.mubr.msk.f32.vlgmr.msra.gmra.mrb[0].mxu0 %vm37_vm0, %v30_v4  ;;  %v201_v19 = vld [vmem:[%s466_s5] sm:$0x1]  ;;  %v209_v21 = vshrl.u32 %v208_v20, 7  ;;  %s308_s5 = sshll.u32 %s380_s3, 4  ;;  %s309_s5 = int_to_ptr.vmem [resolvable:$true] %s308_s5 }
   0x9   :  { %v202_v13 = vld [vmem:[#allocation2] sm:$0x1]  ;;  %s353_s10 = scalar_lea.vmem %s309_s5, 16  ;;  %s357_s11 = scalar_lea.vmem %s309_s5, 32 }
   0xa   :  { %119 = vperm.xlu0 %347, %v116_v6   ;;  %205 = vperm.xlu1 %348, %v202_v13   ;;  %v210_v22 = vsub.s32 0, %v209_v21  ;;  %p354_p0 = scmp.ne.s32.totalorder %s309_s5, %s353_s10  ;;  %p358_p1 = scmp.lt.s32.totalorder %s309_s5, %s309_s5 }
   0xb   :  { %p359_p2 = scmp.lt.s32.totalorder %s357_s11, %s353_s10 }
   0xd   :  { %p360_p3 = por %p359_p2, %p358_p1 }
   0xf   :  { %p361_p4 = pnand %p360_p3, %p354_p0 }
  0x85   :  { %v35_v7 = vpop.permute.xlu0 %34 }
  0x89   :  { %v120_v14 = vpop.permute.xlu0 %119  ;;  %v206_v23 = vpop.permute.xlu1 %205 }
  0x8a   :  { %v211_v24 = vrot.slane %v206_v23, %v210_v22 }
  0xdb   :  { %v110_v8 = vpop.f32.mrb[0].mxu0 }
  0xdc   :  { %v111_v9 = vadd.f32 %v110_v8, %v35_v7  ;;  %v332_v10 = vpop.f32.mrb[1].mxu0 }
  0xde   :  { %v114_v11 = vmax.f32 %v111_v9, 0.0 }
  0xe0   :  { %334 = vmatpush3.msk.msra.mxu1 %vm126_vm2, %v114_v11 }
  0xe1   :  { %336 = vmatmul.mubr.msk.f32.vlgmr.msra.gmra.mrb[0].mxu1 %vm122_vm3, %v115_v12  ;;  %338 = vmatprep.subr.mxu1 %v377_v2 }
  0xe2   :  { %340 = vmatprep.mubr.msk.f32.mxu1 %vm378_vm1, %v377_v2 }
 0x1b4   :  { %v196_v15 = vpop.f32.mrb[0].mxu1 }
 0x1b5   :  { %v197_v16 = vadd.f32 %v196_v15, %v120_v14  ;;  %v337_v17 = vpop.f32.mrb[1].mxu1 }
 0x1b7   :  { %v200_v18 = vmax.f32 %v197_v16, 0.0 }
 0x1b9   :  { %339 = vmatpush3.msk.msra.mxu1 %vm126_vm2, %v200_v18 }
 0x1ba   :  { %341 = vmatmul.mubr.msk.f32.vlgmr.msra.gmra.mrb[2].mxu1 %vm122_vm3, %v201_v19 }
 0x28d   :  { %v284_v25 = vpop.f32.mrb[2].mxu1 }
 0x28e   :  { %v285_v26 = vadd.f32 %v284_v25, %v211_v24  ;;  %v342_v27 = vpop.f32.mrb[3].mxu1 }
 0x290   :  { %v288_v28 = vand.u32 2147483647, %v285_v26  ;;  %vm297_vm5 = vcmp.ge.f32.partialorder %v285_v26, 0.0 }
 0x292   :  { %v289_v29 = vsub.f32 0.0, %v288_v28 }
 0x294   :  { %v290_v30 = vmul.f32 1.442695, %v289_v29 }
 0x296   :  { %349 = vpow2.f32 %v290_v30 }
 0x2a0   :  { %v350_v31 = vpop.eup %349 }
 0x2a1   :  { %v292_v32 = vadd.f32 1.0, %v350_v31 }
 0x2a3   :  { %351 = vrcp.f32 %v292_v32 }
 0x2ad   :  { %v352_v33 = vpop.eup %351 }
 0x2ae   :  { %v294_v34 = vmul.f32 %v352_v33, %v292_v32 }
 0x2b0   :  { %v295_v35 = vsub.f32 2.0, %v294_v34 }
 0x2b2   :  { %v296_v36 = vmul.f32 %v352_v33, %v295_v35 }
 0x2b4   :  { %v298_v37 = vmul.f32 %v350_v31, %v296_v36 }
 0x2b6   :  { %v299_v38 = vsel %vm297_vm5, %v296_v36, %v298_v37 }
 0x2b7   :  { %301 = vst.msk [vmem:[#allocation3] sm:$0x1] %vm300_vm4, %v299_v38 }
 0x2b8   :  { %364 = shalt.err (!%p361_p4)
}
 0x2b9   :  { %s365_s14 = scalar_lea.hbm %s468_s7, 16 }
 0x2ba   :  { %p366_p5 = scmp.ne.s32.totalorder %s468_s7, %s365_s14  ;;  %p369_p6 = scmp.lt.u32.totalorder %s365_s14, %s468_s7 }
 0x2bc   :  { %p371_p7 = pnand %p369_p6, %p366_p5 }
 0x2be   :  { %374 = shalt.err (!%p371_p7)
}
 0x2bf   :  { %311 = dma.vmem_to_hbm [thread:$0]  %s309_s5, 16, %s468_s7, [#allocation4]  }
 0x2c0   :  { %375 = dma.done.wait [#allocation4], 16  }
 0x2c1   :  { %376 = vsyncadd [#allocation4], 4294967280 }
 0x2c2   :  { %315 = vsyncpa [#allocation4], 1 }

</bundles_post_ra>
